<compile_context>
chip_gen: v5e
topology: v5e:2x2
jax: 0.10.0
libtpu: 0.0.40
codegen_flags: <defaults>
</compile_context>

<pallas_src>
import jax
import jax.numpy as jnp
from jax.experimental import pallas as pl
from jax.experimental.pallas import tpu as pltpu

_LANES = 128          # vreg lane width
_SUBLANES = 8         # f32 sublane count
_MAX_TILE_ROWS = 512  # 512*128*4B = 256 KiB / tile -> double-buffers fit all VMEMs


def _linear_kernel(wb_ref, x_ref, o_ref):
    # wb_ref: (1, 2) f32 in SMEM holding [w, b].
    # x_ref / o_ref: (tile_rows, 128) f32 VMEM tiles.
    # in_features == out_features == 1, so the "matmul" is a scalar FMA
    # broadcast over the whole lane-dense tile (pure VPU work).
    o_ref[...] = x_ref[...] * wb_ref[0, 0] + wb_ref[0, 1]


def linear_forward(x, w, b):
    """y = x @ w.T + b for x: [N, 1], w: [1, 1], b: [1] (nn.Linear(1, 1))."""
    n = x.shape[0]
    dtype = x.dtype

    # Lane-dense layout: flatten [N,1] -> [N], pad, and view as (rows, 128)
    # with rows a multiple of 8 (and of the tile size) so every block is
    # (8, 128)-aligned and fully unmasked.
    flat = x.reshape(-1)
    rows = max(_SUBLANES, pl.cdiv(n, _LANES))
    rows = pl.cdiv(rows, _SUBLANES) * _SUBLANES
    tile_rows = min(rows, _MAX_TILE_ROWS)
    rows = pl.cdiv(rows, tile_rows) * tile_rows
    padded = rows * _LANES
    flat = jnp.pad(flat, (0, padded - n))
    x2d = flat.reshape(rows, _LANES)

    # Pack the two scalar parameters into one SMEM array: [[w, b]].
    wb = jnp.concatenate(
        [w.reshape(1, 1), b.reshape(1, 1)], axis=1
    ).astype(jnp.float32)

    grid = (rows // tile_rows,)
    y2d = pl.pallas_call(
        _linear_kernel,
        out_shape=jax.ShapeDtypeStruct((rows, _LANES), dtype),
        grid=grid,
        in_specs=[
            # Scalars live in SMEM, whole (1,2) array, no per-step tiling.
            pl.BlockSpec(memory_space=pltpu.MemorySpace.SMEM),
            pl.BlockSpec((tile_rows, _LANES), lambda i: (i, 0)),
        ],
        out_specs=pl.BlockSpec((tile_rows, _LANES), lambda i: (i, 0)),
        compiler_params=pltpu.CompilerParams(
            dimension_semantics=("parallel",),  # no reduction axis; shard on v7x
        ),
    )(wb, x2d)

    # Drop the padding and restore the [N, 1] Linear output layout.
    return y2d.reshape(-1)[:n].reshape(n, 1)


if __name__ == "__main__":
    key = jax.random.PRNGKey(0)
    k_w, k_b = jax.random.split(key)

    # Deterministic parameter init mimicking nn.Linear(1, 1):
    # uniform(-1/sqrt(in_features), 1/sqrt(in_features)) with in_features = 1.
    w = jax.random.uniform(k_w, (1, 1), jnp.float32, minval=-1.0, maxval=1.0)
    b = jax.random.uniform(k_b, (1,), jnp.float32, minval=-1.0, maxval=1.0)

    # Same input the PyTorch script builds: linspace(-1, 1, 100) with a
    # trailing feature dim -> shape [100, 1].
    x = jnp.linspace(-1.0, 1.0, 100, dtype=jnp.float32).reshape(100, 1)

    y = linear_forward(x, w, b)
    y = jax.block_until_ready(y)

    # Sanity check against plain-JAX reference (f32 throughout).
    y_ref = x @ w.T + b
    assert y.shape == (100, 1)
    assert jnp.allclose(y, y_ref, atol=1e-6), "mismatch vs reference"

    print("KERNEL_OK")
</pallas_src>

<mosaic_0001>
module attributes {stable_mosaic.version = 11 : i64} {
  func.func @_linear_kernel(%arg0: i32, %arg1: memref<1x2xf32, #tpu.memory_space<smem>>, %arg2: memref<8x128xf32, #tpu.memory_space<vmem>>, %arg3: memref<8x128xf32, #tpu.memory_space<vmem>>) attributes {dimension_semantics = [#tpu.dimension_semantics<parallel>], iteration_bounds = array<i64: 1>, scalar_prefetch = 0 : i64, scratch_operands = 0 : i64, tpu.core_type = #tpu.core_type<tc>, window_params = [{transform_indices = @transform_0, window_bounds = array<i64: 1, 2>}, {transform_indices = @transform_1, window_bounds = array<i64: 8, 128>}, {transform_indices = @transform_2, window_bounds = array<i64: 8, 128>}]} {
    %c0 = arith.constant 0 : index
    %c0_0 = arith.constant 0 : index
    %0 = vector.load %arg2[%c0, %c0_0] : memref<8x128xf32, #tpu.memory_space<vmem>>, vector<8x128xf32>
    %c0_1 = arith.constant 0 : index
    %c0_2 = arith.constant 0 : index
    %1 = memref.load %arg1[%c0_1, %c0_2] : memref<1x2xf32, #tpu.memory_space<smem>>
    %2 = vector.broadcast %1 : f32 to vector<8x128xf32>
    %3 = arith.mulf %0, %2 : vector<8x128xf32>
    %c0_3 = arith.constant 0 : index
    %c1 = arith.constant 1 : index
    %4 = memref.load %arg1[%c0_3, %c1] : memref<1x2xf32, #tpu.memory_space<smem>>
    %5 = vector.broadcast %4 : f32 to vector<8x128xf32>
    %6 = arith.addf %3, %5 : vector<8x128xf32>
    %c0_4 = arith.constant 0 : index
    %c0_5 = arith.constant 0 : index
    %7 = vector.load %arg3[%c0_4, %c0_5] : memref<8x128xf32, #tpu.memory_space<vmem>>, vector<8x128xf32>
    tpu.vector_store %arg3[%c0_4, %c0_5], %6 {strides = array<i32>} : memref<8x128xf32, #tpu.memory_space<vmem>>, vector<8x128xf32>,
    return
  }
  func.func @transform_0(%arg0: i32) -> (i32, i32) {
    %c0_i32 = arith.constant 0 : i32
    %c0_i32_0 = arith.constant 0 : i32
    %c0_i32_1 = arith.constant 0 : i32
    return %c0_i32, %c0_i32_0 : i32, i32
  }
  func.func @transform_1(%arg0: i32) -> (i32, i32) {
    %c0_i32 = arith.constant 0 : i32
    %c0_i32_0 = arith.constant 0 : i32
    return %arg0, %c0_i32 : i32, i32
  }
  func.func @transform_2(%arg0: i32) -> (i32, i32) {
    %c0_i32 = arith.constant 0 : i32
    %c0_i32_0 = arith.constant 0 : i32
    return %arg0, %c0_i32 : i32, i32
  }
}

</mosaic_0001>

<bundles_post_ra>
// kernel: tpu_custom_call.1
= control target key start
LH: loop header
LB: loop body
LE: loop exit
PB: predicated region body
PF: predicated region fallthrough
CT: control target
= control target key end

     0   :  { %7 = vsyncpa [#allocation5], 0  ;;  %s162_s0 = inlined_call_operand.hbm [shape: f32[1,2], index: 0, kind: input, shape index: {}]   ;;  %s163_s1 = inlined_call_operand.hbm [shape: f32[8,128], index: 1, kind: input, shape index: {}]   ;;  %s164_s2 = inlined_call_operand.hbm [shape: f32[8,128], index: 2, kind: output, shape index: {}]  }
   0x1   :  { %8 = vsyncpa [#allocation3], 0 }
   0x2   :  { %9 = vsyncpa [#allocation4], 0  ;;  %s15_s11 = sshll.u32 %s162_s0, 4  ;;  %s24_s14 = sshll.u32 %s163_s1, 4  ;;  %s16_s11 = int_to_ptr.hbm [resolvable:$true] %s15_s11  ;;  %s25_s14 = int_to_ptr.hbm [resolvable:$true] %s24_s14 }
   0x3   :  { %s135_s15 = smov [#allocation2]   ;;  %s136_s16 = smov [#allocation6]  }
   0x4   :  { %18 = dma.hbm_to_smem %s16_s11, 16, %s135_s15, [#allocation5]  }
   0x5   :  { %s26_s17 = sshll.u32 %s136_s16, 4  ;;  %s27_s17 = int_to_ptr.vmem [resolvable:$true] %s26_s17 }
   0x6   :  { %29 = dma.hbm_to_vmem [thread:$0]  %s25_s14, 128, %s27_s17, [#allocation3]  }
   0x7   :  { %129 = dma.done.wait [#allocation5], 16  }
   0x8   :  { %130 = vsyncadd [#allocation5], 4294967280 }
   0x9   :  { %131 = dma.done.wait [#allocation3], 128  }
   0xa   :  { %132 = vsyncadd [#allocation3], 4294967168 }
   0xb   :  { %38 = sfence }
   0xc   :  { %s40_s18 = sld [smem:[#allocation2]]  ;;  %v39_v0 = vld [vmem:[#allocation6] sm:$0xff]  ;;  %s137_s0 = smov [#allocation7]  }
   0xd   :  { %s65_s19 = sld [smem:[#allocation2 + $0x1]]  ;;  %s52_s20 = sshll.u32 %s137_s0, 4  ;;  %s53_s20 = int_to_ptr.vmem [resolvable:$true] %s52_s20 }
   0xe   :  { %s54_s22 = sshll.u32 %s164_s2, 4  ;;  %s55_s22 = int_to_ptr.hbm [resolvable:$true] %s54_s22 }
  0x12   :  { %v41_v1 = vstv %s40_s18 }
  0x13   :  { %v42_v2 = vmul.f32 %v41_v1, %v39_v0  ;;  %v44_v3 = vstv %s65_s19 }
  0x15   :  { %v45_v4 = vadd.f32 %v44_v3, %v42_v2 }
  0x17   :  { %46 = vst [vmem:[#allocation7] sm:$0xff] %v45_v4 }
  0x18   :  { %57 = dma.vmem_to_hbm [thread:$0]  %s53_s20, 128, %s55_s22, [#allocation4]  }
  0x19   :  { %133 = dma.done.wait [#allocation4], 128  }
  0x1a   :  { %134 = vsyncadd [#allocation4], 4294967168 }
  0x1b   :  { %62 = vsyncpa [#allocation3], 1 }
  0x1c   :  { %63 = vsyncpa [#allocation4], 1 }
  0x1d   :  { %64 = vsyncpa [#allocation5], 1 }

</bundles_post_ra>
